<compile_context>
chip_gen: v7x
topology: tpu7x:2x2x1
jax: 0.10.0
libtpu: 0.0.40
codegen_flags: <defaults>
</compile_context>

<pallas_src>
import functools

import jax
import jax.numpy as jnp
from jax.experimental import pallas as pl
from jax.experimental.pallas import tpu as pltpu

_LANE = 128


# --------------------------------------------------------------------------
# Kernel
# --------------------------------------------------------------------------
def _ls_loss_kernel(logits_ref, tgt_ref, loss_ref,
                    m_sc, l_sc, sx_sc, xt_sc, *,
                    smoothing, use_smoothing, ignore_index,
                    vocab, v_chunk, tail_mask):
    """One (row-tile, vocab-chunk) step of an online log-softmax CE loss."""
    kv = pl.program_id(1)
    nv = pl.num_programs(1)

    @pl.when(kv == 0)
    def _init():
        m_sc[...] = jnp.full_like(m_sc, -jnp.inf)
        l_sc[...] = jnp.zeros_like(l_sc)
        sx_sc[...] = jnp.zeros_like(sx_sc)
        xt_sc[...] = jnp.zeros_like(xt_sc)

    x = logits_ref[...].astype(jnp.float32)          # (TN, TV) f32 in VMEM
    _, tv = x.shape

    tgt = tgt_ref[...]                                # (TN, 1) int32
    # torch.clamp(targets, 0, vocab-1) semantics (also keeps ignored rows safe)
    tgt_c = jnp.clip(tgt, 0, vocab - 1)

    # Global vocab indices of this chunk, shape (1, TV) — broadcast against
    # the (TN,1) targets; never materialize a (TN, V) iota.
    lane = jax.lax.broadcasted_iota(jnp.int32, (1, tv), 1) + kv * v_chunk

    # ---- pass 1 over x: block max, target logit, (optional) sum of x ----
    m_blk = jnp.max(x, axis=-1, keepdims=True)                        # (TN,1)
    xt_blk = jnp.sum(jnp.where(lane == tgt_c, x, 0.0),
                     axis=-1, keepdims=True)                          # (TN,1)

    m_old = m_sc[...]
    m_new = jnp.maximum(m_old, m_blk)
    alpha = jnp.exp(m_old - m_new)

    # ---- pass 2 over x: exp-sum against the updated running max ----
    p_blk = jnp.sum(jnp.exp(x - m_new), axis=-1, keepdims=True)       # (TN,1)

    m_sc[...] = m_new
    l_sc[...] = alpha * l_sc[...] + p_blk
    xt_sc[...] = xt_sc[...] + xt_blk
    if use_smoothing:
        if tail_mask:
            # last chunk may contain padded lanes (filled with -1e30 in HBM);
            # they already vanish from max / exp-sum, but must not pollute
            # sum_x (only paid when V is not a multiple of the chunk size).
            x_sum_src = jnp.where(lane < vocab, x, 0.0)
        else:
            x_sum_src = x
        sx_sc[...] = sx_sc[...] + jnp.sum(x_sum_src, axis=-1, keepdims=True)

    @pl.when(kv == nv - 1)
    def _finalize():
        logz = m_sc[...] + jnp.log(l_sc[...])                 # logsumexp
        logp_t = xt_sc[...] - logz
        if use_smoothing:
            # sum_v logp_v = sum_v x_v - V * logsumexp
            sum_logp = sx_sc[...] - vocab * logz
            denom = max(vocab - 1, 1)
            loss = -((1.0 - smoothing) * logp_t
                     + (smoothing / denom) * (sum_logp - logp_t))
        else:
            loss = -logp_t                                    # plain NLL
        valid = (tgt != ignore_index)
        loss_ref[...] = jnp.where(valid, loss, 0.0)           # zero ignored rows


# --------------------------------------------------------------------------
# Tile / VMEM sizing helpers
# --------------------------------------------------------------------------
def _vmem_capacity_bytes():
    try:
        info = pltpu.get_tpu_info()
        cap = getattr(info, "vmem_capacity_bytes", None)
        if cap:
            return int(cap)
    except Exception:
        pass
    try:
        kind = jax.devices()[0].device_kind.lower()
    except Exception:
        kind = ""
    if "v7" in kind:
        return 64 << 20
    if any(t in kind for t in ("v6", "v5", "v4")):
        return 128 << 20
    return 64 << 20          # unknown chip: conservative


def _choose_tiles(n_rows, vocab, itemsize, cap, tile_n=None, v_chunk=None):
    """Pick (row tile, vocab chunk, padded vocab) from the real working set.

    Per-element VMEM cost per grid step:
      2*itemsize   double-buffered input block
      4            in-kernel f32 copy of the block
      ~12          exp / compare / select temporaries (worst case)
    """
    pack = max(8, 32 // itemsize)           # sublane packing: f32 8, bf16 16, i8 32
    bytes_per_elem = 2 * itemsize + 16
    budget = int(cap * 0.55)                # leave headroom for scratch/spill
    max_elems = max(pack * _LANE, budget // bytes_per_elem)

    user_tile = tile_n is not None

    # ---- vocab chunk ----
    if v_chunk is None:
        min_rows = 4 * pack                 # keep at least this many rows per tile
        if vocab * min_rows <= max_elems:
            v_chunk = vocab                 # whole vocab in one block (exact width)
        else:
            v_chunk = (max_elems // min_rows) // _LANE * _LANE
            v_chunk = min(max(_LANE, v_chunk), 8192)
    v_chunk = int(v_chunk)
    if v_chunk >= vocab:
        v_chunk, v_padded = vocab, vocab
    else:
        v_chunk = max(_LANE, (v_chunk // _LANE) * _LANE)   # lane alignment
        if v_chunk >= vocab:
            v_chunk, v_padded = vocab, vocab
        else:
            v_padded = -(-vocab // v_chunk) * v_chunk

    # ---- row tile ----
    if tile_n is None:
        rows_fit = max(pack, max_elems // max(1, v_chunk))
        # bytes-based clamp: keep the per-buffer input block around <= 8 MiB
        rows_dma = max(pack, (8 << 20) // max(1, v_chunk * itemsize))
        tile_n = min(rows_fit, rows_dma)
    tile_n = max(pack, (int(tile_n) // pack) * pack)
    n_ceil = -(-n_rows // pack) * pack
    tile_n = min(tile_n, max(pack, n_ceil))
    # keep >=2 row-grid steps so the "parallel" axis can shard across v7x's
    # two TensorCores (auto-tiling only; an explicit tile_n is respected)
    if (not user_tile) and n_rows > 2 * pack and -(-n_rows // tile_n) < 2:
        half = -(-n_ceil // 2)
        tile_n = max(pack, (half // pack) * pack)
    return int(tile_n), int(v_chunk), int(v_padded)


# --------------------------------------------------------------------------
# Wrapper
# --------------------------------------------------------------------------
def adaptive_label_smoothing_loss(logits, targets, *, smoothing=0.1,
                                  reduction='mean', ignore_index=-100,
                                  return_base_loss=False,
                                  tile_n=None, v_chunk=None):
    """JAX/Pallas equivalent of AdaptiveLabelSmoothingLoss.forward.

    logits:  (batch, seq, vocab) float (kept in its native HBM dtype)
    targets: (batch, seq) int
    """
    vocab = logits.shape[-1]
    logits2d = logits.reshape(-1, vocab)
    targets1d = targets.reshape(-1).astype(jnp.int32)
    n = logits2d.shape[0]
    itemsize = jnp.dtype(logits2d.dtype).itemsize

    cap = _vmem_capacity_bytes()
    tile_n, v_chunk, v_padded = _choose_tiles(n, vocab, itemsize, cap,
                                              tile_n=tile_n, v_chunk=v_chunk)

    # Pad the vocab axis (only when chunking) with a huge-negative fill so the
    # padded lanes vanish from max / exp-sum; sum_x masks them in-kernel.
    if v_padded != vocab:
        logits2d = jnp.pad(logits2d, ((0, 0), (0, v_padded - vocab)),
                           constant_values=-1e30)

    # Pad the token dimension to a multiple of tile_n with ignored rows.
    n_pad = -(-n // tile_n) * tile_n
    if n_pad != n:
        logits2d = jnp.pad(logits2d, ((0, n_pad - n), (0, 0)))
        targets_pad = jnp.pad(targets1d, (0, n_pad - n),
                              constant_values=ignore_index)
    else:
        targets_pad = targets1d
    tgt2d = targets_pad.reshape(n_pad, 1)

    use_smoothing = (smoothing >= 0.01) and (not return_base_loss) and (vocab > 1)
    kernel = functools.partial(
        _ls_loss_kernel,
        smoothing=float(smoothing),
        use_smoothing=bool(use_smoothing),
        ignore_index=int(ignore_index),
        vocab=int(vocab),
        v_chunk=int(v_chunk),
        tail_mask=bool(v_padded != vocab))

    grid = (n_pad // tile_n, v_padded // v_chunk)

    # VMEM actually used per step: double-buffered input block + in-kernel f32
    # copy + temporaries (+ slack for targets / output / accumulators).
    need = tile_n * v_chunk * (2 * itemsize + 16) + (4 << 20)
    vmem_limit = int(min(cap - (2 << 20), max(need, 16 << 20)))

    cost = pl.CostEstimate(
        flops=6 * n_pad * v_padded,
        transcendentals=n_pad * v_padded,
        bytes_accessed=n_pad * v_padded * itemsize + n_pad * 8,
    )

    loss_tok = pl.pallas_call(
        kernel,
        out_shape=jax.ShapeDtypeStruct((n_pad, 1), jnp.float32),
        grid_spec=pltpu.PrefetchScalarGridSpec(
            num_scalar_prefetch=0,
            grid=grid,
            in_specs=[
                pl.BlockSpec((tile_n, v_chunk), lambda i, j: (i, j)),
                pl.BlockSpec((tile_n, 1), lambda i, j: (i, 0)),
            ],
            out_specs=pl.BlockSpec((tile_n, 1), lambda i, j: (i, 0)),
            scratch_shapes=[pltpu.VMEM((tile_n, 1), jnp.float32)] * 4,
        ),
        compiler_params=pltpu.CompilerParams(
            dimension_semantics=("parallel", "arbitrary"),
            vmem_limit_bytes=vmem_limit),
        cost_estimate=cost,
    )(logits2d, tgt2d)

    # valid-token count computed directly from the (unpadded) targets
    n_valid = jnp.sum((targets1d != ignore_index).astype(jnp.float32))
    total_loss = jnp.sum(loss_tok)

    if reduction == 'mean':
        # PyTorch path returns 0.0 when no valid tokens exist
        return jnp.where(n_valid > 0, total_loss / jnp.maximum(n_valid, 1.0), 0.0)
    elif reduction == 'sum':
        return jnp.where(n_valid > 0, total_loss, 0.0)
    else:
        # TODO(synk): reduction='none' in PyTorch returns a compressed
        # (num_valid,) vector; dynamic shapes aren't expressible here, so
        # return the per-token (masked, zero-padded) losses instead.
        return loss_tok[:n, 0]


# --------------------------------------------------------------------------
# Pure-JAX reference (mirrors the PyTorch forward)
# --------------------------------------------------------------------------
def _reference(logits, targets, smoothing=0.1, ignore_index=-100,
               reduction='mean'):
    vocab = logits.shape[-1]
    x = logits.reshape(-1, vocab).astype(jnp.float32)
    t = targets.reshape(-1)
    mask = t != ignore_index
    tc = jnp.clip(t, 0, vocab - 1)
    logp = jax.nn.log_softmax(x, axis=-1)
    logp_t = jnp.take_along_axis(logp, tc[:, None], axis=-1)[:, 0]
    if smoothing < 0.01:
        loss = -logp_t
    else:
        sum_logp = jnp.sum(logp, axis=-1)
        loss = -((1.0 - smoothing) * logp_t
                 + (smoothing / (vocab - 1)) * (sum_logp - logp_t))
    n_valid = jnp.sum(mask)
    total = jnp.sum(jnp.where(mask, loss, 0.0))
    if reduction == 'mean':
        return jnp.where(n_valid > 0, total / jnp.maximum(n_valid, 1), 0.0)
    return jnp.where(n_valid > 0, total, 0.0)


if __name__ == "__main__":
    key = jax.random.PRNGKey(0)
    k1, k2 = jax.random.split(key)

    # ---- test 1: f32, mean reduction, ignore_index masking ----
    batch, seq, vocab = 2, 8, 128
    logits = jax.random.normal(k1, (batch, seq, vocab), dtype=jnp.float32)
    targets = jax.random.randint(k2, (batch, seq), 0, vocab, dtype=jnp.int32)
    targets = targets.at[0, :2].set(-100)

    out = adaptive_label_smoothing_loss(logits, targets, smoothing=0.1,
                                        reduction='mean')
    out = jax.block_until_ready(out)
    ref = _reference(logits, targets, smoothing=0.1)
    assert jnp.allclose(out, ref, rtol=1e-5, atol=1e-5), (out, ref)

    # ---- test 2: bf16 logits (HBM storage dtype), f32 math in-kernel ----
    logits_bf16 = logits.astype(jnp.bfloat16)
    out_bf = adaptive_label_smoothing_loss(logits_bf16, targets, smoothing=0.1,
                                           reduction='mean')
    out_bf = jax.block_until_ready(out_bf)
    ref_bf = _reference(logits_bf16, targets, smoothing=0.1)
    assert jnp.allclose(out_bf, ref_bf, rtol=1e-4, atol=1e-4), (out_bf, ref_bf)

    # ---- test 3: smoothing < 0.01 -> plain NLL path ----
    out_nll = adaptive_label_smoothing_loss(logits, targets, smoothing=0.0,
                                            reduction='mean')
    out_nll = jax.block_until_ready(out_nll)
    ref_nll = _reference(logits, targets, smoothing=0.0)
    assert jnp.allclose(out_nll, ref_nll, rtol=1e-5, atol=1e-5), (out_nll, ref_nll)

    # ---- test 4: multi-tile row grid + row padding, sum reduction ----
    k3, k4 = jax.random.split(k1)
    b2, s2, v2 = 2, 100, 256
    lg2 = jax.random.normal(k3, (b2, s2, v2), dtype=jnp.float32)
    tg2 = jax.random.randint(k4, (b2, s2), 0, v2, dtype=jnp.int32)
    tg2 = tg2.at[1, 50:].set(-100)
    out2 = adaptive_label_smoothing_loss(lg2, tg2, smoothing=0.05,
                                         reduction='sum', tile_n=64)
    out2 = jax.block_until_ready(out2)
    ref2 = _reference(lg2, tg2, smoothing=0.05, reduction='sum')
    assert jnp.allclose(out2, ref2, rtol=1e-5, atol=1e-4), (out2, ref2)

    # ---- test 5: chunked vocab axis (online softmax), V % chunk == 0 ----
    k5, k6 = jax.random.split(k3)
    b3, s3, v3 = 2, 16, 384
    lg3 = jax.random.normal(k5, (b3, s3, v3), dtype=jnp.float32)
    tg3 = jax.random.randint(k6, (b3, s3), 0, v3, dtype=jnp.int32)
    tg3 = tg3.at[0, :3].set(-100)
    out3 = adaptive_label_smoothing_loss(lg3, tg3, smoothing=0.1,
                                         reduction='mean', v_chunk=128)
    out3 = jax.block_until_ready(out3)
    ref3 = _reference(lg3, tg3, smoothing=0.1)
    assert jnp.allclose(out3, ref3, rtol=1e-5, atol=1e-5), (out3, ref3)

    # ---- test 6: chunked vocab with tail padding (V not 128-aligned) ----
    k7, k8 = jax.random.split(k5)
    b4, s4, v4 = 2, 8, 200
    lg4 = jax.random.normal(k7, (b4, s4, v4), dtype=jnp.float32)
    tg4 = jax.random.randint(k8, (b4, s4), 0, v4, dtype=jnp.int32)
    tg4 = tg4.at[1, -2:].set(-100)
    out4 = adaptive_label_smoothing_loss(lg4, tg4, smoothing=0.1,
                                         reduction='mean', v_chunk=128)
    out4 = jax.block_until_ready(out4)
    ref4 = _reference(lg4, tg4, smoothing=0.1)
    assert jnp.allclose(out4, ref4, rtol=1e-5, atol=1e-5), (out4, ref4)

    print("KERNEL_OK")
</pallas_src>

<mosaic_0001>
module attributes {stable_mosaic.version = 11 : i64} {
  func.func @_ls_loss_kernel(%arg0: i32, %arg1: i32, %arg2: memref<16x128xf32, #tpu.memory_space<vmem>>, %arg3: memref<16x1xi32, #tpu.memory_space<vmem>>, %arg4: memref<16x1xf32, #tpu.memory_space<vmem>>, %arg5: memref<16x1xf32, #tpu.memory_space<vmem>>, %arg6: memref<16x1xf32, #tpu.memory_space<vmem>>, %arg7: memref<16x1xf32, #tpu.memory_space<vmem>>, %arg8: memref<16x1xf32, #tpu.memory_space<vmem>>) attributes {dimension_semantics = [#tpu.dimension_semantics<parallel>, #tpu.dimension_semantics<arbitrary>], iteration_bounds = array<i64: 1, 1>, scalar_prefetch = 0 : i64, scratch_operands = 4 : i64, tpu.core_type = #tpu.core_type<tc>, window_params = [{transform_indices = @transform_0, window_bounds = array<i64: 16, 128>}, {transform_indices = @transform_1, window_bounds = array<i64: 16, 1>}, {transform_indices = @transform_2, window_bounds = array<i64: 16, 1>}]} {
    %c0_i32 = arith.constant 0 : i32
    %0 = arith.cmpi eq, %arg1, %c0_i32 : i32
    %1 = arith.extui %0 : i1 to i32
    %c0_i32_0 = arith.constant 0 : i32
    %2 = arith.cmpi ne, %1, %c0_i32_0 : i32
    scf.if %2 {
      %cst_27 = arith.constant 0xFF800000 : f32
      %47 = vector.broadcast %cst_27 : f32 to vector<16x1xf32>
      %c0_28 = arith.constant 0 : index
      %c0_29 = arith.constant 0 : index
      %48 = vector.load %arg5[%c0_28, %c0_29] : memref<16x1xf32, #tpu.memory_space<vmem>>, vector<16x1xf32>
      tpu.vector_store %arg5[%c0_28, %c0_29], %47 {strides = array<i32>} : memref<16x1xf32, #tpu.memory_space<vmem>>, vector<16x1xf32>,
      %cst_30 = arith.constant 0.000000e+00 : f32
      %49 = vector.broadcast %cst_30 : f32 to vector<16x1xf32>
      %c0_31 = arith.constant 0 : index
      %c0_32 = arith.constant 0 : index
      %50 = vector.load %arg6[%c0_31, %c0_32] : memref<16x1xf32, #tpu.memory_space<vmem>>, vector<16x1xf32>
      tpu.vector_store %arg6[%c0_31, %c0_32], %49 {strides = array<i32>} : memref<16x1xf32, #tpu.memory_space<vmem>>, vector<16x1xf32>,
      %cst_33 = arith.constant 0.000000e+00 : f32
      %51 = vector.broadcast %cst_33 : f32 to vector<16x1xf32>
      %c0_34 = arith.constant 0 : index
      %c0_35 = arith.constant 0 : index
      %52 = vector.load %arg7[%c0_34, %c0_35] : memref<16x1xf32, #tpu.memory_space<vmem>>, vector<16x1xf32>
      tpu.vector_store %arg7[%c0_34, %c0_35], %51 {strides = array<i32>} : memref<16x1xf32, #tpu.memory_space<vmem>>, vector<16x1xf32>,
      %cst_36 = arith.constant 0.000000e+00 : f32
      %53 = vector.broadcast %cst_36 : f32 to vector<16x1xf32>
      %c0_37 = arith.constant 0 : index
      %c0_38 = arith.constant 0 : index
      %54 = vector.load %arg8[%c0_37, %c0_38] : memref<16x1xf32, #tpu.memory_space<vmem>>, vector<16x1xf32>
      tpu.vector_store %arg8[%c0_37, %c0_38], %53 {strides = array<i32>} : memref<16x1xf32, #tpu.memory_space<vmem>>, vector<16x1xf32>,
    } else {
    }
    %c0 = arith.constant 0 : index
    %c0_1 = arith.constant 0 : index
    %3 = vector.load %arg2[%c0, %c0_1] : memref<16x128xf32, #tpu.memory_space<vmem>>, vector<16x128xf32>
    %c0_2 = arith.constant 0 : index
    %c0_3 = arith.constant 0 : index
    %4 = vector.load %arg3[%c0_2, %c0_3] : memref<16x1xi32, #tpu.memory_space<vmem>>, vector<16x1xi32>
    %c0_i32_4 = arith.constant 0 : i32
    %c127_i32 = arith.constant 127 : i32
    %5 = vector.broadcast %c0_i32_4 : i32 to vector<16x1xi32>
    %6 = arith.maxsi %5, %4 : vector<16x1xi32>
    %7 = vector.broadcast %c127_i32 : i32 to vector<16x1xi32>
    %8 = arith.minsi %7, %6 : vector<16x1xi32>
    %9 = tpu.iota {dimensions = array<i32: 1>} : vector<1x128xi32>
    %c128_i32 = arith.constant 128 : i32
    %10 = arith.muli %arg1, %c128_i32 : i32
    %11 = vector.broadcast %10 : i32 to vector<1x128xi32>
    %12 = arith.addi %9, %11 : vector<1x128xi32>
    %cst = arith.constant dense<0xFF800000> : vector<16xf32>
    %13 = vector.multi_reduction <maximumf>, %3, %cst [1] : vector<16x128xf32> to vector<16xf32>
    %14 = vector.shape_cast %13 : vector<16xf32> to vector<16x1xf32>
    %15 = vector.broadcast %12 : vector<1x128xi32> to vector<16x128xi32>
    %16 = vector.broadcast %8 : vector<16x1xi32> to vector<16x128xi32>
    %17 = arith.cmpi eq, %15, %16 : vector<16x128xi32>
    %cst_5 = arith.constant 0.000000e+00 : f32
    %18 = vector.broadcast %cst_5 : f32 to vector<16x128xf32>
    %19 = arith.select %17, %3, %18 : vector<16x128xi1>, vector<16x128xf32>
    %cst_6 = arith.constant dense<0.000000e+00> : vector<16xf32>
    %20 = vector.multi_reduction <add>, %19, %cst_6 [1] : vector<16x128xf32> to vector<16xf32>
    %21 = vector.shape_cast %20 : vector<16xf32> to vector<16x1xf32>
    %c0_7 = arith.constant 0 : index
    %c0_8 = arith.constant 0 : index
    %22 = vector.load %arg5[%c0_7, %c0_8] : memref<16x1xf32, #tpu.memory_space<vmem>>, vector<16x1xf32>
    %23 = arith.maximumf %22, %14 : vector<16x1xf32>
    %24 = arith.subf %22, %23 : vector<16x1xf32>
    %25 = math.exp %24 : vector<16x1xf32>
    %26 = vector.broadcast %23 : vector<16x1xf32> to vector<16x128xf32>
    %27 = arith.subf %3, %26 : vector<16x128xf32>
    %28 = math.exp %27 : vector<16x128xf32>
    %cst_9 = arith.constant dense<0.000000e+00> : vector<16xf32>
    %29 = vector.multi_reduction <add>, %28, %cst_9 [1] : vector<16x128xf32> to vector<16xf32>
    %30 = vector.shape_cast %29 : vector<16xf32> to vector<16x1xf32>
    %c0_10 = arith.constant 0 : index
    %c0_11 = arith.constant 0 : index
    %31 = vector.load %arg5[%c0_10, %c0_11] : memref<16x1xf32, #tpu.memory_space<vmem>>, vector<16x1xf32>
    tpu.vector_store %arg5[%c0_10, %c0_11], %23 {strides = array<i32>} : memref<16x1xf32, #tpu.memory_space<vmem>>, vector<16x1xf32>,
    %c0_12 = arith.constant 0 : index
    %c0_13 = arith.constant 0 : index
    %32 = vector.load %arg6[%c0_12, %c0_13] : memref<16x1xf32, #tpu.memory_space<vmem>>, vector<16x1xf32>
    %33 = arith.mulf %25, %32 : vector<16x1xf32>
    %34 = arith.addf %33, %30 : vector<16x1xf32>
    %c0_14 = arith.constant 0 : index
    %c0_15 = arith.constant 0 : index
    %35 = vector.load %arg6[%c0_14, %c0_15] : memref<16x1xf32, #tpu.memory_space<vmem>>, vector<16x1xf32>
    tpu.vector_store %arg6[%c0_14, %c0_15], %34 {strides = array<i32>} : memref<16x1xf32, #tpu.memory_space<vmem>>, vector<16x1xf32>,
    %c0_16 = arith.constant 0 : index
    %c0_17 = arith.constant 0 : index
    %36 = vector.load %arg8[%c0_16, %c0_17] : memref<16x1xf32, #tpu.memory_space<vmem>>, vector<16x1xf32>
    %37 = arith.addf %36, %21 : vector<16x1xf32>
    %c0_18 = arith.constant 0 : index
    %c0_19 = arith.constant 0 : index
    %38 = vector.load %arg8[%c0_18, %c0_19] : memref<16x1xf32, #tpu.memory_space<vmem>>, vector<16x1xf32>
    tpu.vector_store %arg8[%c0_18, %c0_19], %37 {strides = array<i32>} : memref<16x1xf32, #tpu.memory_space<vmem>>, vector<16x1xf32>,
    %c0_20 = arith.constant 0 : index
    %c0_21 = arith.constant 0 : index
    %39 = vector.load %arg7[%c0_20, %c0_21] : memref<16x1xf32, #tpu.memory_space<vmem>>, vector<16x1xf32>
    %cst_22 = arith.constant dense<0.000000e+00> : vector<16xf32>
    %40 = vector.multi_reduction <add>, %3, %cst_22 [1] : vector<16x128xf32> to vector<16xf32>
    %41 = vector.shape_cast %40 : vector<16xf32> to vector<16x1xf32>
    %42 = arith.addf %39, %41 : vector<16x1xf32>
    %c0_23 = arith.constant 0 : index
    %c0_24 = arith.constant 0 : index
    %43 = vector.load %arg7[%c0_23, %c0_24] : memref<16x1xf32, #tpu.memory_space<vmem>>, vector<16x1xf32>
    tpu.vector_store %arg7[%c0_23, %c0_24], %42 {strides = array<i32>} : memref<16x1xf32, #tpu.memory_space<vmem>>, vector<16x1xf32>,
    %c0_i32_25 = arith.constant 0 : i32
    %44 = arith.cmpi eq, %arg1, %c0_i32_25 : i32
    %45 = arith.extui %44 : i1 to i32
    %c0_i32_26 = arith.constant 0 : i32
    %46 = arith.cmpi ne, %45, %c0_i32_26 : i32
    scf.if %46 {
      %c0_27 = arith.constant 0 : index
      %c0_28 = arith.constant 0 : index
      %47 = vector.load %arg5[%c0_27, %c0_28] : memref<16x1xf32, #tpu.memory_space<vmem>>, vector<16x1xf32>
      %c0_29 = arith.constant 0 : index
      %c0_30 = arith.constant 0 : index
      %48 = vector.load %arg6[%c0_29, %c0_30] : memref<16x1xf32, #tpu.memory_space<vmem>>, vector<16x1xf32>
      %49 = math.log %48 : vector<16x1xf32>
      %50 = arith.addf %47, %49 : vector<16x1xf32>
      %c0_31 = arith.constant 0 : index
      %c0_32 = arith.constant 0 : index
      %51 = vector.load %arg8[%c0_31, %c0_32] : memref<16x1xf32, #tpu.memory_space<vmem>>, vector<16x1xf32>
      %52 = arith.subf %51, %50 : vector<16x1xf32>
      %c0_33 = arith.constant 0 : index
      %c0_34 = arith.constant 0 : index
      %53 = vector.load %arg7[%c0_33, %c0_34] : memref<16x1xf32, #tpu.memory_space<vmem>>, vector<16x1xf32>
      %cst_35 = arith.constant 1.280000e+02 : f32
      %54 = vector.broadcast %cst_35 : f32 to vector<16x1xf32>
      %55 = arith.mulf %54, %50 : vector<16x1xf32>
      %56 = arith.subf %53, %55 : vector<16x1xf32>
      %cst_36 = arith.constant 0.899999976 : f32
      %57 = vector.broadcast %cst_36 : f32 to vector<16x1xf32>
      %58 = arith.mulf %57, %52 : vector<16x1xf32>
      %59 = arith.subf %56, %52 : vector<16x1xf32>
      %cst_37 = arith.constant 7.87401571E-4 : f32
      %60 = vector.broadcast %cst_37 : f32 to vector<16x1xf32>
      %61 = arith.mulf %60, %59 : vector<16x1xf32>
      %62 = arith.addf %58, %61 : vector<16x1xf32>
      %cst_38 = arith.constant 0.000000e+00 : f32
      %63 = vector.broadcast %cst_38 : f32 to vector<16x1xf32>
      %64 = arith.subf %63, %62 : vector<16x1xf32>
      %c-100_i32 = arith.constant -100 : i32
      %65 = vector.broadcast %c-100_i32 : i32 to vector<16x1xi32>
      %66 = arith.cmpi ne, %4, %65 : vector<16x1xi32>
      %cst_39 = arith.constant 0.000000e+00 : f32
      %67 = vector.broadcast %cst_39 : f32 to vector<16x1xf32>
      %68 = arith.select %66, %64, %67 : vector<16x1xi1>, vector<16x1xf32>
      %c0_40 = arith.constant 0 : index
      %c0_41 = arith.constant 0 : index
      %69 = vector.load %arg4[%c0_40, %c0_41] : memref<16x1xf32, #tpu.memory_space<vmem>>, vector<16x1xf32>
      tpu.vector_store %arg4[%c0_40, %c0_41], %68 {strides = array<i32>} : memref<16x1xf32, #tpu.memory_space<vmem>>, vector<16x1xf32>,
    } else {
    }
    return
  }
  func.func @transform_0(%arg0: i32, %arg1: i32) -> (i32, i32) {
    %c0_i32 = arith.constant 0 : i32
    return %arg0, %arg1 : i32, i32
  }
  func.func @transform_1(%arg0: i32, %arg1: i32) -> (i32, i32) {
    %c0_i32 = arith.constant 0 : i32
    %c0_i32_0 = arith.constant 0 : i32
    return %arg0, %c0_i32 : i32, i32
  }
  func.func @transform_2(%arg0: i32, %arg1: i32) -> (i32, i32) {
    %c0_i32 = arith.constant 0 : i32
    %c0_i32_0 = arith.constant 0 : i32
    return %arg0, %c0_i32 : i32, i32
  }
}

</mosaic_0001>

<bundles_post_ra>
// kernel: tpu_custom_call.1
= control target key start
LH: loop header
LB: loop body
LE: loop exit
PB: predicated region body
PF: predicated region fallthrough
CT: control target
= control target key end

     0   :  { %vm15_vm0 = vcmask 7168   ;;  %v176_v1 = vmov -inf   ;;  %v177_v3 = vmov 0   ;;  %v178_v4 = vmov 0.0   ;;  %s246_s0 = inlined_call_operand.vmem [shape: f32[16,128], index: 0, kind: input, shape index: {}]   ;;  %s247_s1 = inlined_call_operand.vmem [shape: s32[16,1], index: 1, kind: input, shape index: {}]   ;;  %s248_s2 = inlined_call_operand.vmem [shape: f32[16,1], index: 2, kind: output, shape index: {}]  }
   0x1   :  { %v197_v0 = vld [vmem:[%s246_s0] sm:$0xff]  ;;  %16 = vst.msk [vmem:[#allocation2] sm:$0xff] %vm15_vm0, %v176_v1  ;;  %17 = vst.msk [vmem:[#allocation2 + $0x8] sm:$0xff] %vm15_vm0, %v176_v1  ;;  %v25_v2 = vld [vmem:[%s246_s0 + $0x8] sm:$0xff]  ;;  %162 = vset.pattern.permute.xlu1 %v177_v3  ;;  %163 = vset.pattern.permute.xlu0 %v177_v3  ;;  %v36_v19 = vlaneseq }
   0x2   :  { %41 = vmax.xlane.f32.xlu0 %v197_v0  ;;  %18 = vst.msk [vmem:[#allocation3] sm:$0xff] %vm15_vm0, %v178_v4  ;;  %19 = vst.msk [vmem:[#allocation3 + $0x8] sm:$0xff] %vm15_vm0, %v178_v4  ;;  %v214_v5 = vld [vmem:[%s247_s1] sm:$0xff]  ;;  %v221_v8 = vld [vmem:[%s247_s1 + $0x8] sm:$0xff] }
   0x3   :  { %20 = vst.msk [vmem:[#allocation4] sm:$0xff] %vm15_vm0, %v178_v4  ;;  %21 = vst.msk [vmem:[#allocation4 + $0x8] sm:$0xff] %vm15_vm0, %v178_v4  ;;  %vm28_vm1 = vcmp.gt.s32.totalorder %v214_v5, 0  ;;  %vm30_vm3 = vcmp.gt.s32.totalorder %v221_v8, 0  ;;  %v37_v20 = vand.u32 127, %v36_v19  ;;  %vm149_vm7 = vcmp.ne.s32.totalorder %v214_v5, 4294967196 }
   0x4   :  { %22 = vst.msk [vmem:[#allocation5] sm:$0xff] %vm15_vm0, %v178_v4  ;;  %23 = vst.msk [vmem:[#allocation5 + $0x8] sm:$0xff] %vm15_vm0, %v178_v4  ;;  %v29_v6 = vsel %vm28_vm1, %v214_v5, 0  ;;  %v31_v13 = vsel %vm30_vm3, %v221_v8, 0  ;;  %vm150_vm8 = vcmp.ne.s32.totalorder %v221_v8, 4294967196 }
   0x5   :  { %vm32_vm2 = vcmp.lt.s32.totalorder %v29_v6, 127  ;;  %vm34_vm4 = vcmp.lt.s32.totalorder %v31_v13, 127 }
   0x6   :  { %43 = vmax.xlane.f32.xlu0 %v25_v2  ;;  %v33_v7 = vsel %vm32_vm2, %v29_v6, 127  ;;  %v35_v18 = vsel %vm34_vm4, %v31_v13, 127 }
   0x8   :  { %v59_v9 = vld [vmem:[#allocation2] sm:$0xff]  ;;  %v60_v12 = vld [vmem:[#allocation2 + $0x8] sm:$0xff] }
   0x9   :  { %v92_v39 = vld [vmem:[#allocation3] sm:$0xff]  ;;  %v93_v43 = vld [vmem:[#allocation3 + $0x8] sm:$0xff] }
   0xa   :  { %v106_v52 = vld [vmem:[#allocation4] sm:$0xff]  ;;  %v107_v56 = vld [vmem:[#allocation4 + $0x8] sm:$0xff] }
   0xb   :  { %v100_v33 = vld [vmem:[#allocation5] sm:$0xff]  ;;  %v101_v48 = vld [vmem:[#allocation5 + $0x8] sm:$0xff] }
  0x1c   :  { %46 = vperm.xlu0 %163, %v33_v7  }
  0x8f   :  { %v42_v10 = vpop.xlane.xlu0 %41 }
  0x90   :  { %v61_v11 = vmax.f32 %v59_v9, %v42_v10 }
  0x92   :  { %v63_v14 = vsub.f32 %v59_v9, %v61_v11  ;;  %90 = vst.msk [vmem:[#allocation2] sm:$0xff] %vm15_vm0, %v61_v11  ;;  %71 = vperm.xlu1 %162, %v61_v11  }
  0x93   :  { %v44_v15 = vpop.xlane.xlu0 %43 }
  0x94   :  { %v62_v16 = vmax.f32 %v60_v12, %v44_v15  ;;  %v65_v36 = vmul.f32 1.442695, %v63_v14 }
  0x96   :  { %v64_v17 = vsub.f32 %v60_v12, %v62_v16  ;;  %91 = vst.msk [vmem:[#allocation2 + $0x8] sm:$0xff] %vm15_vm0, %v62_v16  ;;  %76 = vperm.xlu1 %162, %v62_v16  }
  0x98   :  { %v67_v37 = vmul.f32 1.442695, %v64_v17 }
  0x99   :  { %v119_v61 = vld [vmem:[#allocation2] sm:$0xff] }
  0x9a   :  { %49 = vperm.xlu1 %162, %v35_v18  }
  0x9b   :  { %v47_v21 = vpop.permute.xlu0 %46 }
  0x9c   :  { %vm51_vm5 = vcmp.eq.s32.totalorder %v37_v20, %v47_v21 }
  0x9d   :  { %v53_v22 = vsel %vm51_vm5, %v197_v0, 0.0  ;;  %v120_v4 = vld [vmem:[#allocation2 + $0x8] sm:$0xff] }
  0x9e   :  { %55 = vadd.xlane.f32.xlu0 %v53_v22 }
 0x111   :  { %v72_v23 = vpop.permute.xlu1 %71 }
 0x112   :  { %v79_v24 = vsub.f32 %v197_v0, %v72_v23 }
 0x114   :  { %v81_v25 = vmul.f32 1.442695, %v79_v24 }
 0x115   :  { %v77_v26 = vpop.permute.xlu1 %76 }
 0x116   :  { %164 = vpow2.f32 %v81_v25  ;;  %v80_v27 = vsub.f32 %v25_v2, %v77_v26 }
 0x118   :  { %v83_v28 = vmul.f32 1.442695, %v80_v27 }
 0x119   :  { %v50_v30 = vpop.permute.xlu1 %49 }
 0x11a   :  { %166 = vpow2.f32 %v83_v28  ;;  %vm52_vm6 = vcmp.eq.s32.totalorder %v37_v20, %v50_v30 }
 0x11b   :  { %v54_v32 = vsel %vm52_vm6, %v25_v2, 0.0  ;;  %168 = vpow2.f32 %v65_v36 }
 0x11c   :  { %170 = vpow2.f32 %v67_v37 }
 0x120   :  { %v165_v29 = vpop.eup %164 }
 0x121   :  { %85 = vadd.xlane.f32.xlu1 %v165_v29 }
 0x124   :  { %v167_v31 = vpop.eup %166 }
 0x125   :  { %87 = vadd.xlane.f32.xlu1 %v167_v31  ;;  %v169_v38 = vpop.eup %168 }
 0x126   :  { %v94_v40 = vmul.f32 %v169_v38, %v92_v39  ;;  %v171_v41 = vpop.eup %170 }
 0x127   :  { %v95_v45 = vmul.f32 %v171_v41, %v93_v43 }
 0x129   :  { %57 = vadd.xlane.f32.xlu1 %v54_v32 }
 0x12b   :  { %v56_v34 = vpop.xlane.xlu0 %55 }
 0x12c   :  { %v102_v35 = vadd.f32 %v100_v33, %v56_v34 }
 0x12d   :  { %108 = vadd.xlane.f32.xlu1 %v197_v0 }
 0x12e   :  { %104 = vst.msk [vmem:[#allocation5] sm:$0xff] %vm15_vm0, %v102_v35 }
 0x131   :  { %110 = vadd.xlane.f32.xlu1 %v25_v2 }
 0x135   :  { %v129_v0 = vld [vmem:[#allocation5] sm:$0xff] }
 0x1ae   :  { %v86_v42 = vpop.xlane.xlu1 %85 }
 0x1af   :  { %v96_v44 = vadd.f32 %v94_v40, %v86_v42 }
 0x1b1   :  { %98 = vst.msk [vmem:[#allocation3] sm:$0xff] %vm15_vm0, %v96_v44 }
 0x1b2   :  { %v88_v46 = vpop.xlane.xlu1 %87 }
 0x1b3   :  { %v97_v47 = vadd.f32 %v95_v45, %v88_v46 }
 0x1b5   :  { %99 = vst.msk [vmem:[#allocation3 + $0x8] sm:$0xff] %vm15_vm0, %v97_v47 }
 0x1b6   :  { %v58_v49 = vpop.xlane.xlu1 %57 }
 0x1b7   :  { %v103_v50 = vadd.f32 %v101_v48, %v58_v49 }
 0x1b8   :  { %v121_v51 = vld [vmem:[#allocation3] sm:$0xff] }
 0x1b9   :  { %172 = vlog2.f32 %v121_v51  ;;  %105 = vst.msk [vmem:[#allocation5 + $0x8] sm:$0xff] %vm15_vm0, %v103_v50 }
 0x1ba   :  { %v109_v53 = vpop.xlane.xlu1 %108 }
 0x1bb   :  { %v112_v54 = vadd.f32 %v109_v53, %v106_v52 }
 0x1bc   :  { %v122_v55 = vld [vmem:[#allocation3 + $0x8] sm:$0xff] }
 0x1bd   :  { %174 = vlog2.f32 %v122_v55  ;;  %114 = vst.msk [vmem:[#allocation4] sm:$0xff] %vm15_vm0, %v112_v54 }
 0x1be   :  { %v111_v57 = vpop.xlane.xlu1 %110 }
 0x1bf   :  { %v113_v58 = vadd.f32 %v111_v57, %v107_v56 }
 0x1c0   :  { %v130_v13 = vld [vmem:[#allocation5 + $0x8] sm:$0xff] }
 0x1c1   :  { %115 = vst.msk [vmem:[#allocation4 + $0x8] sm:$0xff] %vm15_vm0, %v113_v58 }
 0x1c3   :  { %v173_v59 = vpop.eup %172 }
 0x1c4   :  { %v124_v60 = vmul.f32 0.6931472, %v173_v59  ;;  %v133_v1 = vld [vmem:[#allocation4] sm:$0xff] }
 0x1c6   :  { %v127_v62 = vadd.f32 %v124_v60, %v119_v61 }
 0x1c7   :  { %v175_v63 = vpop.eup %174 }
 0x1c8   :  { %v126_v2 = vmul.f32 0.6931472, %v175_v63  ;;  %v135_v3 = vmul.f32 128.0, %v127_v62  ;;  %v131_v7 = vsub.f32 %v129_v0, %v127_v62  ;;  %v134_v10 = vld [vmem:[#allocation4 + $0x8] sm:$0xff] }
 0x1ca   :  { %v128_v6 = vadd.f32 %v126_v2, %v120_v4  ;;  %v137_v9 = vsub.f32 %v133_v1, %v135_v3  ;;  %v139_v15 = vmul.f32 0.9, %v131_v7 }
 0x1cc   :  { %v141_v11 = vsub.f32 %v137_v9, %v131_v7  ;;  %v136_v12 = vmul.f32 128.0, %v128_v6  ;;  %v132_v14 = vsub.f32 %v130_v13, %v128_v6 }
 0x1ce   :  { %v143_v16 = vmul.f32 0.0007874016, %v141_v11  ;;  %v138_v17 = vsub.f32 %v134_v10, %v136_v12  ;;  %v140_v20 = vmul.f32 0.9, %v132_v14 }
 0x1d0   :  { %v145_v18 = vadd.f32 %v143_v16, %v139_v15  ;;  %v142_v19 = vsub.f32 %v138_v17, %v132_v14 }
 0x1d2   :  { %v147_v21 = vsub.f32 0.0, %v145_v18  ;;  %v144_v22 = vmul.f32 0.0007874016, %v142_v19 }
 0x1d4   :  { %v151_v23 = vsel %vm149_vm7, %v147_v21, 0.0  ;;  %v146_v24 = vadd.f32 %v144_v22, %v140_v20 }
 0x1d5   :  { %153 = vst.msk [vmem:[%s248_s2] sm:$0xff] %vm15_vm0, %v151_v23 }
 0x1d6   :  { %v148_v25 = vsub.f32 0.0, %v146_v24 }
 0x1d8   :  { %v152_v26 = vsel %vm150_vm8, %v148_v25, 0.0 }
 0x1d9   :  { %154 = vst.msk [vmem:[%s248_s2 + $0x8] sm:$0xff] %vm15_vm0, %v152_v26 }

</bundles_post_ra>
